<compile_context>
chip_gen: v6e
topology: v6e:2x2x1
jax: 0.10.0
libtpu: 0.0.40
codegen_flags: <defaults>
</compile_context>

<pallas_src>
import jax
import jax.numpy as jnp
from jax import lax
from jax.experimental import pallas as pl
from jax.experimental.pallas import tpu as pltpu

# Feature / hidden dims used inside the kernel.
F_IN = 784      # input features kept at natural width (full-last-dim block)
H1 = 320        # fc1 out
H2 = 128        # 100 -> 128 (lane pad, zero weight cols / zero bias)
H3 = 128        # 50  -> 128
OUT = 128       # 10  -> 128 (lane-dense output; real logits = first 10 lanes)
N_CLASSES = 10

TB_MAX = 512    # max batch tile (multiple of 256 for the 256-wide MXU)


def net3_kernel(x_ref,
                w1_ref, b1_ref,
                w2_ref, b2_ref,
                w3_ref, b3_ref,
                w4_ref, b4_ref,
                o_ref):
    # x arrives as f32 (tb, 784); cast to bf16 for the MXU (accumulate in f32).
    x = x_ref[...].astype(jnp.bfloat16)

    # fc1 + ReLU   (dropout = identity in eval mode)
    h1 = jnp.dot(x, w1_ref[...], preferred_element_type=jnp.float32) + b1_ref[...]
    h1 = jnp.maximum(h1, 0.0).astype(jnp.bfloat16)                    # (tb, 320)

    # fc2 + ReLU
    h2 = jnp.dot(h1, w2_ref[...], preferred_element_type=jnp.float32) + b2_ref[...]
    h2 = jnp.maximum(h2, 0.0).astype(jnp.bfloat16)                    # (tb, 128)

    # fc3 + ReLU
    h3 = jnp.dot(h2, w3_ref[...], preferred_element_type=jnp.float32) + b3_ref[...]
    h3 = jnp.maximum(h3, 0.0).astype(jnp.bfloat16)                    # (tb, 128)

    # fc4
    logits = jnp.dot(h3, w4_ref[...], preferred_element_type=jnp.float32) + b4_ref[...]

    # Mask padded logit lanes (>= N_CLASSES) so they don't pollute the softmax.
    lane = lax.broadcasted_iota(jnp.int32, logits.shape, 1)
    valid = lane < N_CLASSES
    logits = jnp.where(valid, logits, -jnp.inf)

    # Numerically stable log_softmax over the last axis (f32 math).
    m = jnp.max(logits, axis=-1, keepdims=True)
    shifted = logits - m
    lse = jnp.log(jnp.sum(jnp.exp(shifted), axis=-1, keepdims=True))
    out = shifted - lse

    # Keep padded lanes finite (0.0) in the stored output; cast to bf16.
    out = jnp.where(valid, out, 0.0)
    o_ref[...] = out.astype(o_ref.dtype)


def _round_up(x, m):
    return ((x + m - 1) // m) * m


def _choose_tb(B, tb_max=TB_MAX):
    """Batch tile: minimal padding for small B, >=2 tiles once B > 256."""
    if B <= 256:
        return _round_up(B, 16)            # single tile, <=15 rows of padding
    n = max(2, pl.cdiv(B, tb_max))         # at least two grid steps (v7x TCs)
    return min(tb_max, _round_up(pl.cdiv(B, n), 16))


def _pad_2d(a, rows, cols):
    out = jnp.zeros((rows, cols), a.dtype)
    return out.at[:a.shape[0], :a.shape[1]].set(a)


def prepare_params(params):
    """Pad / cast params to the kernel's lane-aligned layout.

    Input: ((w1,b1),...,(w4,b4)) with w stored as [in, out] f32 (transposed vs.
    torch's [out, in]) and b as [out] f32.
    Output: flat tuple of bf16 weights and f32 (1, out_padded) biases.
    """
    (w1, b1), (w2, b2), (w3, b3), (w4, b4) = params

    w1p = _pad_2d(w1, F_IN, H1).astype(jnp.bfloat16)      # (784, 320)
    b1p = _pad_2d(b1.reshape(1, -1), 1, H1)               # (1, 320) f32

    w2p = _pad_2d(w2, H1, H2).astype(jnp.bfloat16)        # (320, 128)
    b2p = _pad_2d(b2.reshape(1, -1), 1, H2)               # (1, 128) f32

    w3p = _pad_2d(w3, H2, H3).astype(jnp.bfloat16)        # (128, 128)
    b3p = _pad_2d(b3.reshape(1, -1), 1, H3)               # (1, 128) f32

    w4p = _pad_2d(w4, H3, OUT).astype(jnp.bfloat16)       # (128, 128)
    b4p = _pad_2d(b4.reshape(1, -1), 1, OUT)              # (1, 128) f32

    return (w1p, b1p, w2p, b2p, w3p, b3p, w4p, b4p)


def net3_forward(x, params, *, tb_max=TB_MAX):
    """x: any shape whose trailing dims flatten to 784 (e.g. [B,1,28,28])."""
    x2d = x.reshape(-1, F_IN).astype(jnp.float32)
    B = x2d.shape[0]

    tb = _choose_tb(B, tb_max)
    n_tiles = pl.cdiv(B, tb)
    Bp = n_tiles * tb
    if Bp != B:
        x2d = jnp.pad(x2d, ((0, Bp - B), (0, 0)))   # only when needed

    w1p, b1p, w2p, b2p, w3p, b3p, w4p, b4p = prepare_params(params)

    # Weights/biases: constant index_map -> loaded once, resident in VMEM.
    const = lambda shape: pl.BlockSpec(shape, lambda i: (0, 0))
    in_specs = [
        pl.BlockSpec((tb, F_IN), lambda i: (i, 0)),   # x tile (pipelined, f32)
        const((F_IN, H1)), const((1, H1)),            # fc1
        const((H1, H2)),   const((1, H2)),            # fc2
        const((H2, H3)),   const((1, H3)),            # fc3
        const((H3, OUT)),  const((1, OUT)),           # fc4
    ]
    out_specs = pl.BlockSpec((tb, OUT), lambda i: (i, 0))

    weight_bytes = (w1p.size + w2p.size + w3p.size + w4p.size) * 2 \
                   + (b1p.size + b2p.size + b3p.size + b4p.size) * 4
    cost = pl.CostEstimate(
        flops=2 * Bp * (F_IN * H1 + H1 * H2 + H2 * H3 + H3 * OUT),
        transcendentals=Bp * OUT,
        bytes_accessed=weight_bytes + Bp * F_IN * 4 + Bp * OUT * 2,
    )

    out_padded = pl.pallas_call(
        net3_kernel,
        out_shape=jax.ShapeDtypeStruct((Bp, OUT), jnp.bfloat16),
        grid=(n_tiles,),
        in_specs=in_specs,
        out_specs=out_specs,
        compiler_params=pltpu.CompilerParams(
            dimension_semantics=("parallel",)),
        cost_estimate=cost,
    )(x2d, w1p, b1p, w2p, b2p, w3p, b3p, w4p, b4p)

    return out_padded[:B, :N_CLASSES]


def net3_reference(x, params):
    """Pure-JAX f32 reference (eval mode: dropout = identity)."""
    (w1, b1), (w2, b2), (w3, b3), (w4, b4) = params
    h = x.reshape(-1, F_IN).astype(jnp.float32)
    h = jnp.maximum(h @ w1 + b1, 0.0)
    h = jnp.maximum(h @ w2 + b2, 0.0)
    h = jnp.maximum(h @ w3 + b3, 0.0)
    logits = h @ w4 + b4
    return jax.nn.log_softmax(logits, axis=-1)


def init_linear(key, fan_in, fan_out):
    """Deterministic synthetic init, PyTorch-Linear-style uniform bounds."""
    kw, kb = jax.random.split(key)
    bound = 1.0 / (fan_in ** 0.5)
    # weight stored as [in, out] (transposed vs. torch's [out, in])
    w = jax.random.uniform(kw, (fan_in, fan_out), jnp.float32, -bound, bound)
    b = jax.random.uniform(kb, (fan_out,), jnp.float32, -bound, bound)
    return w, b


if __name__ == "__main__":
    key = jax.random.PRNGKey(0)
    k_x, k_x2, k1, k2, k3, k4 = jax.random.split(key, 6)

    params = (
        init_linear(k1, 784, 320),
        init_linear(k2, 320, 100),
        init_linear(k3, 100, 50),
        init_linear(k4, 50, 10),
    )

    # Small MNIST-like batch (NCHW like PyTorch; flattened in wrapper).
    x = jax.random.normal(k_x, (8, 1, 28, 28), jnp.float32)
    out = jax.block_until_ready(net3_forward(x, params))
    assert out.shape == (8, 10)

    # sanity: log_softmax rows exponentiate-sum to ~1 and match f32 reference
    row_sums = jnp.sum(jnp.exp(out.astype(jnp.float32)), axis=-1)
    assert bool(jnp.all(jnp.abs(row_sums - 1.0) < 1e-2))
    ref = net3_reference(x, params)
    assert bool(jnp.max(jnp.abs(out.astype(jnp.float32) - ref)) < 5e-2)

    # Exercise the multi-tile path (B > 256 -> 2 grid steps, batch padding).
    x_big = jax.random.normal(k_x2, (272, 1, 28, 28), jnp.float32)
    out_big = jax.block_until_ready(net3_forward(x_big, params))
    assert out_big.shape == (272, 10)
    ref_big = net3_reference(x_big, params)
    assert bool(jnp.max(jnp.abs(out_big.astype(jnp.float32) - ref_big)) < 5e-2)

    print("KERNEL_OK")
</pallas_src>

<mosaic_0001>
module attributes {stable_mosaic.version = 11 : i64} {
  func.func @net3_kernel(%arg0: i32, %arg1: memref<16x784xf32, #tpu.memory_space<vmem>>, %arg2: memref<784x320xbf16, #tpu.memory_space<vmem>>, %arg3: memref<1x320xf32, #tpu.memory_space<vmem>>, %arg4: memref<320x128xbf16, #tpu.memory_space<vmem>>, %arg5: memref<1x128xf32, #tpu.memory_space<vmem>>, %arg6: memref<128x128xbf16, #tpu.memory_space<vmem>>, %arg7: memref<1x128xf32, #tpu.memory_space<vmem>>, %arg8: memref<128x128xbf16, #tpu.memory_space<vmem>>, %arg9: memref<1x128xf32, #tpu.memory_space<vmem>>, %arg10: memref<16x128xbf16, #tpu.memory_space<vmem>>) attributes {dimension_semantics = [#tpu.dimension_semantics<parallel>], iteration_bounds = array<i64: 1>, scalar_prefetch = 0 : i64, scratch_operands = 0 : i64, tpu.core_type = #tpu.core_type<tc>, window_params = [{transform_indices = @transform_0, window_bounds = array<i64: 16, 784>}, {pipeline_mode = #tpu.pipeline_mode<synchronous>, transform_indices = @transform_1, window_bounds = array<i64: 784, 320>}, {pipeline_mode = #tpu.pipeline_mode<synchronous>, transform_indices = @transform_2, window_bounds = array<i64: 1, 320>}, {pipeline_mode = #tpu.pipeline_mode<synchronous>, transform_indices = @transform_3, window_bounds = array<i64: 320, 128>}, {pipeline_mode = #tpu.pipeline_mode<synchronous>, transform_indices = @transform_4, window_bounds = array<i64: 1, 128>}, {pipeline_mode = #tpu.pipeline_mode<synchronous>, transform_indices = @transform_5, window_bounds = array<i64: 128, 128>}, {pipeline_mode = #tpu.pipeline_mode<synchronous>, transform_indices = @transform_6, window_bounds = array<i64: 1, 128>}, {pipeline_mode = #tpu.pipeline_mode<synchronous>, transform_indices = @transform_7, window_bounds = array<i64: 128, 128>}, {pipeline_mode = #tpu.pipeline_mode<synchronous>, transform_indices = @transform_8, window_bounds = array<i64: 1, 128>}, {transform_indices = @transform_9, window_bounds = array<i64: 16, 128>}]} {
    %c0 = arith.constant 0 : index
    %c0_0 = arith.constant 0 : index
    %0 = vector.load %arg1[%c0, %c0_0] : memref<16x784xf32, #tpu.memory_space<vmem>>, vector<16x784xf32>
    %1 = arith.truncf %0 : vector<16x784xf32> to vector<16x784xbf16>
    %c0_1 = arith.constant 0 : index
    %c0_2 = arith.constant 0 : index
    %2 = vector.load %arg2[%c0_1, %c0_2] : memref<784x320xbf16, #tpu.memory_space<vmem>>, vector<784x320xbf16>
    %cst = arith.constant dense<0.000000e+00> : vector<16x320xf32>
    %3 = tpu.matmul %1, %2, %cst {dimension_numbers = #tpu.dot_dimension_numbers<[1], [0], [0], [1], [0, 0, 1, 1], [], []>} : vector<16x784xbf16>, vector<784x320xbf16>, vector<16x320xf32> -> vector<16x320xf32>
    %c0_3 = arith.constant 0 : index
    %c0_4 = arith.constant 0 : index
    %4 = vector.load %arg3[%c0_3, %c0_4] : memref<1x320xf32, #tpu.memory_space<vmem>>, vector<1x320xf32>
    %5 = vector.broadcast %4 : vector<1x320xf32> to vector<16x320xf32>
    %6 = arith.addf %3, %5 : vector<16x320xf32>
    %cst_5 = arith.constant 0.000000e+00 : f32
    %7 = vector.broadcast %cst_5 : f32 to vector<16x320xf32>
    %8 = arith.maximumf %6, %7 : vector<16x320xf32>
    %9 = arith.truncf %8 : vector<16x320xf32> to vector<16x320xbf16>
    %c0_6 = arith.constant 0 : index
    %c0_7 = arith.constant 0 : index
    %10 = vector.load %arg4[%c0_6, %c0_7] : memref<320x128xbf16, #tpu.memory_space<vmem>>, vector<320x128xbf16>
    %cst_8 = arith.constant dense<0.000000e+00> : vector<16x128xf32>
    %11 = tpu.matmul %9, %10, %cst_8 {dimension_numbers = #tpu.dot_dimension_numbers<[1], [0], [0], [1], [0, 0, 1, 1], [], []>} : vector<16x320xbf16>, vector<320x128xbf16>, vector<16x128xf32> -> vector<16x128xf32>
    %c0_9 = arith.constant 0 : index
    %c0_10 = arith.constant 0 : index
    %12 = vector.load %arg5[%c0_9, %c0_10] : memref<1x128xf32, #tpu.memory_space<vmem>>, vector<1x128xf32>
    %13 = vector.broadcast %12 : vector<1x128xf32> to vector<16x128xf32>
    %14 = arith.addf %11, %13 : vector<16x128xf32>
    %cst_11 = arith.constant 0.000000e+00 : f32
    %15 = vector.broadcast %cst_11 : f32 to vector<16x128xf32>
    %16 = arith.maximumf %14, %15 : vector<16x128xf32>
    %17 = arith.truncf %16 : vector<16x128xf32> to vector<16x128xbf16>
    %c0_12 = arith.constant 0 : index
    %c0_13 = arith.constant 0 : index
    %18 = vector.load %arg6[%c0_12, %c0_13] : memref<128x128xbf16, #tpu.memory_space<vmem>>, vector<128x128xbf16>
    %cst_14 = arith.constant dense<0.000000e+00> : vector<16x128xf32>
    %19 = tpu.matmul %17, %18, %cst_14 {dimension_numbers = #tpu.dot_dimension_numbers<[1], [0], [0], [1], [0, 0, 1, 1], [], []>} : vector<16x128xbf16>, vector<128x128xbf16>, vector<16x128xf32> -> vector<16x128xf32>
    %c0_15 = arith.constant 0 : index
    %c0_16 = arith.constant 0 : index
    %20 = vector.load %arg7[%c0_15, %c0_16] : memref<1x128xf32, #tpu.memory_space<vmem>>, vector<1x128xf32>
    %21 = vector.broadcast %20 : vector<1x128xf32> to vector<16x128xf32>
    %22 = arith.addf %19, %21 : vector<16x128xf32>
    %cst_17 = arith.constant 0.000000e+00 : f32
    %23 = vector.broadcast %cst_17 : f32 to vector<16x128xf32>
    %24 = arith.maximumf %22, %23 : vector<16x128xf32>
    %25 = arith.truncf %24 : vector<16x128xf32> to vector<16x128xbf16>
    %c0_18 = arith.constant 0 : index
    %c0_19 = arith.constant 0 : index
    %26 = vector.load %arg8[%c0_18, %c0_19] : memref<128x128xbf16, #tpu.memory_space<vmem>>, vector<128x128xbf16>
    %cst_20 = arith.constant dense<0.000000e+00> : vector<16x128xf32>
    %27 = tpu.matmul %25, %26, %cst_20 {dimension_numbers = #tpu.dot_dimension_numbers<[1], [0], [0], [1], [0, 0, 1, 1], [], []>} : vector<16x128xbf16>, vector<128x128xbf16>, vector<16x128xf32> -> vector<16x128xf32>
    %c0_21 = arith.constant 0 : index
    %c0_22 = arith.constant 0 : index
    %28 = vector.load %arg9[%c0_21, %c0_22] : memref<1x128xf32, #tpu.memory_space<vmem>>, vector<1x128xf32>
    %29 = vector.broadcast %28 : vector<1x128xf32> to vector<16x128xf32>
    %30 = arith.addf %27, %29 : vector<16x128xf32>
    %31 = tpu.iota {dimensions = array<i32: 1>} : vector<16x128xi32>
    %c10_i32 = arith.constant 10 : i32
    %32 = vector.broadcast %c10_i32 : i32 to vector<16x128xi32>
    %33 = arith.cmpi slt, %31, %32 : vector<16x128xi32>
    %cst_23 = arith.constant 0xFF800000 : f32
    %34 = vector.broadcast %cst_23 : f32 to vector<16x128xf32>
    %35 = arith.select %33, %30, %34 : vector<16x128xi1>, vector<16x128xf32>
    %cst_24 = arith.constant dense<0xFF800000> : vector<16xf32>
    %36 = vector.multi_reduction <maximumf>, %35, %cst_24 [1] : vector<16x128xf32> to vector<16xf32>
    %37 = vector.shape_cast %36 : vector<16xf32> to vector<16x1xf32>
    %38 = vector.broadcast %37 : vector<16x1xf32> to vector<16x128xf32>
    %39 = arith.subf %35, %38 : vector<16x128xf32>
    %40 = math.exp %39 : vector<16x128xf32>
    %cst_25 = arith.constant dense<0.000000e+00> : vector<16xf32>
    %41 = vector.multi_reduction <add>, %40, %cst_25 [1] : vector<16x128xf32> to vector<16xf32>
    %42 = vector.shape_cast %41 : vector<16xf32> to vector<16x1xf32>
    %43 = math.log %42 : vector<16x1xf32>
    %44 = vector.broadcast %43 : vector<16x1xf32> to vector<16x128xf32>
    %45 = arith.subf %39, %44 : vector<16x128xf32>
    %cst_26 = arith.constant 0.000000e+00 : f32
    %46 = vector.broadcast %cst_26 : f32 to vector<16x128xf32>
    %47 = arith.select %33, %45, %46 : vector<16x128xi1>, vector<16x128xf32>
    %48 = arith.truncf %47 : vector<16x128xf32> to vector<16x128xbf16>
    %c0_27 = arith.constant 0 : index
    %c0_28 = arith.constant 0 : index
    %49 = vector.load %arg10[%c0_27, %c0_28] : memref<16x128xbf16, #tpu.memory_space<vmem>>, vector<16x128xbf16>
    tpu.vector_store %arg10[%c0_27, %c0_28], %48 {strides = array<i32>} : memref<16x128xbf16, #tpu.memory_space<vmem>>, vector<16x128xbf16>,
    return
  }
  func.func @transform_0(%arg0: i32) -> (i32, i32) {
    %c0_i32 = arith.constant 0 : i32
    %c0_i32_0 = arith.constant 0 : i32
    return %arg0, %c0_i32 : i32, i32
  }
  func.func @transform_1(%arg0: i32) -> (i32, i32) {
    %c0_i32 = arith.constant 0 : i32
    %c0_i32_0 = arith.constant 0 : i32
    %c0_i32_1 = arith.constant 0 : i32
    return %c0_i32, %c0_i32_0 : i32, i32
  }
  func.func @transform_2(%arg0: i32) -> (i32, i32) {
    %c0_i32 = arith.constant 0 : i32
    %c0_i32_0 = arith.constant 0 : i32
    %c0_i32_1 = arith.constant 0 : i32
    return %c0_i32, %c0_i32_0 : i32, i32
  }
  func.func @transform_3(%arg0: i32) -> (i32, i32) {
    %c0_i32 = arith.constant 0 : i32
    %c0_i32_0 = arith.constant 0 : i32
    %c0_i32_1 = arith.constant 0 : i32
    return %c0_i32, %c0_i32_0 : i32, i32
  }
  func.func @transform_4(%arg0: i32) -> (i32, i32) {
    %c0_i32 = arith.constant 0 : i32
    %c0_i32_0 = arith.constant 0 : i32
    %c0_i32_1 = arith.constant 0 : i32
    return %c0_i32, %c0_i32_0 : i32, i32
  }
  func.func @transform_5(%arg0: i32) -> (i32, i32) {
    %c0_i32 = arith.constant 0 : i32
    %c0_i32_0 = arith.constant 0 : i32
    %c0_i32_1 = arith.constant 0 : i32
    return %c0_i32, %c0_i32_0 : i32, i32
  }
  func.func @transform_6(%arg0: i32) -> (i32, i32) {
    %c0_i32 = arith.constant 0 : i32
    %c0_i32_0 = arith.constant 0 : i32
    %c0_i32_1 = arith.constant 0 : i32
    return %c0_i32, %c0_i32_0 : i32, i32
  }
  func.func @transform_7(%arg0: i32) -> (i32, i32) {
    %c0_i32 = arith.constant 0 : i32
    %c0_i32_0 = arith.constant 0 : i32
    %c0_i32_1 = arith.constant 0 : i32
    return %c0_i32, %c0_i32_0 : i32, i32
  }
  func.func @transform_8(%arg0: i32) -> (i32, i32) {
    %c0_i32 = arith.constant 0 : i32
    %c0_i32_0 = arith.constant 0 : i32
    %c0_i32_1 = arith.constant 0 : i32
    return %c0_i32, %c0_i32_0 : i32, i32
  }
  func.func @transform_9(%arg0: i32) -> (i32, i32) {
    %c0_i32 = arith.constant 0 : i32
    %c0_i32_0 = arith.constant 0 : i32
    return %arg0, %c0_i32 : i32, i32
  }
}

</mosaic_0001>

<bundles_post_ra>
// kernel: tpu_custom_call.1
= control target key start
LH: loop header
LB: loop body
LE: loop exit
PB: predicated region body
PF: predicated region fallthrough
CT: control target
= control target key end

     0   :  { %vm1052_vm0 = vcmask 130048   ;;  %vm2576_vm1 = vmmov 0   ;;  %s3297_s0 = inlined_call_operand.vmem [shape: f32[16,784], index: 0, kind: input, shape index: {}]   ;;  %s3298_s1 = inlined_call_operand.vmem [shape: bf16[784,320], index: 1, kind: input, shape index: {}]   ;;  %s3299_s2 = inlined_call_operand.vmem [shape: f32[1,320], index: 2, kind: input, shape index: {}]   ;;  %s3300_s3 = inlined_call_operand.vmem [shape: bf16[320,128], index: 3, kind: input, shape index: {}]   ;;  %s3301_s4 = inlined_call_operand.vmem [shape: f32[1,128], index: 4, kind: input, shape index: {}]   ;;  %s3302_s5 = inlined_call_operand.vmem [shape: bf16[128,128], index: 5, kind: input, shape index: {}]   ;;  %s3303_s6 = inlined_call_operand.vmem [shape: f32[1,128], index: 6, kind: input, shape index: {}]   ;;  %s3304_s7 = inlined_call_operand.vmem [shape: bf16[128,128], index: 7, kind: input, shape index: {}]   ;;  %s3305_s8 = inlined_call_operand.vmem [shape: f32[1,128], index: 8, kind: input, shape index: {}]   ;;  %s3306_s9 = inlined_call_operand.hbm [shape: bf16[16,128], index: 9, kind: output, shape index: {}]  }
   0x1   :  { %v2312_v0 = vld [vmem:[%s3298_s1 + $0xac] ss:$12 sps:$4 sm:$0xff]   ;;  %v2316_v2 = vld [vmem:[%s3298_s1 + $0xa8] ss:$12 sps:$4 sm:$0xff]   ;;  %v2322_v6 = vld [vmem:[%s3298_s1 + $0x90] ss:$12 sps:$4 sm:$0xff]  }
   0x2   :  { %v2314_v1 = vld [vmem:[%s3298_s1 + $0x22c] ss:$12 sps:$4 sm:$0xff]   ;;  %1056 = vmatprep.subr.bf16.mxu0 %v2312_v0  ;;  %v2317_v3 = vld [vmem:[%s3298_s1 + $0x228] ss:$12 sps:$4 sm:$0xff]   ;;  %v2323_v7 = vld [vmem:[%s3298_s1 + $0x210] ss:$12 sps:$4 sm:$0xff]  }
   0x3   :  { %1099 = vmatprep.subr.bf16.mxu1 %v2314_v1  ;;  %v2318_v4 = vld [vmem:[%s3298_s1 + $0x94] ss:$12 sps:$4 sm:$0xff]   ;;  %1057 = vmatpush1.bf16.msra.mxu0 %v2316_v2  ;;  %v2324_v8 = vld [vmem:[%s3298_s1 + $0x7c] ss:$12 sps:$4 sm:$0xff]   ;;  %v2328_v10 = vld [vmem:[%s3298_s1 + $0x78] ss:$12 sps:$4 sm:$0xff]  }
   0x4   :  { %1100 = vmatpush1.bf16.msra.mxu1 %v2317_v3  ;;  %v2320_v5 = vld [vmem:[%s3298_s1 + $0x214] ss:$12 sps:$4 sm:$0xff]   ;;  %1058 = vmatprep.subr.bf16.mxu0 %v2318_v4  ;;  %v2326_v9 = vld [vmem:[%s3298_s1 + $0x1fc] ss:$12 sps:$4 sm:$0xff]   ;;  %v2329_v11 = vld [vmem:[%s3298_s1 + $0x1f8] ss:$12 sps:$4 sm:$0xff]  }
   0x5   :  { %1101 = vmatprep.subr.bf16.mxu1 %v2320_v5  ;;  %v2330_v12 = vld [vmem:[%s3298_s1 + $0x64] ss:$12 sps:$4 sm:$0xff]   ;;  %v2334_v14 = vld [vmem:[%s3298_s1 + $0x60] ss:$12 sps:$4 sm:$0xff]   ;;  %v2340_v18 = vld [vmem:[%s3298_s1 + $0x48] ss:$12 sps:$4 sm:$0xff]  }
   0x6   :  { %v2332_v13 = vld [vmem:[%s3298_s1 + $0x1e4] ss:$12 sps:$4 sm:$0xff]   ;;  %v2335_v15 = vld [vmem:[%s3298_s1 + $0x1e0] ss:$12 sps:$4 sm:$0xff]   ;;  %v2341_v19 = vld [vmem:[%s3298_s1 + $0x1c8] ss:$12 sps:$4 sm:$0xff]  }
   0x7   :  { %1059 = vmatpush1.bf16.msra.mxu0 %v2322_v6  ;;  %v2336_v16 = vld [vmem:[%s3298_s1 + $0x4c] ss:$12 sps:$4 sm:$0xff]   ;;  %v2342_v20 = vld [vmem:[%s3298_s1 + $0x34] ss:$12 sps:$4 sm:$0xff]   ;;  %v2346_v22 = vld [vmem:[%s3298_s1 + $0x30] ss:$12 sps:$4 sm:$0xff]  }
   0x8   :  { %1102 = vmatpush1.bf16.msra.mxu1 %v2323_v7  ;;  %1060 = vmatprep.subr.bf16.mxu0 %v2324_v8  ;;  %v2338_v17 = vld [vmem:[%s3298_s1 + $0x1cc] ss:$12 sps:$4 sm:$0xff]   ;;  %v2344_v21 = vld [vmem:[%s3298_s1 + $0x1b4] ss:$12 sps:$4 sm:$0xff]   ;;  %v2347_v23 = vld [vmem:[%s3298_s1 + $0x1b0] ss:$12 sps:$4 sm:$0xff]  }
   0x9   :  { %1103 = vmatprep.subr.bf16.mxu1 %v2326_v9  ;;  %v2348_v24 = vld [vmem:[%s3298_s1 + $0x1c] ss:$12 sps:$4 sm:$0xff]   ;;  %v2352_v26 = vld [vmem:[%s3298_s1 + $0x18] ss:$12 sps:$4 sm:$0xff]   ;;  %v2358_v30 = vld [vmem:[%s3298_s1] ss:$12 sps:$4 sm:$0xff]  }
   0xa   :  { %v2350_v25 = vld [vmem:[%s3298_s1 + $0x19c] ss:$12 sps:$4 sm:$0xff]   ;;  %v2353_v27 = vld [vmem:[%s3298_s1 + $0x198] ss:$12 sps:$4 sm:$0xff]   ;;  %v2359_v31 = vld [vmem:[%s3298_s1 + $0x180] ss:$12 sps:$4 sm:$0xff]  }
   0xb   :  { %1061 = vmatpush1.bf16.msra.mxu0 %v2328_v10  ;;  %v2354_v28 = vld [vmem:[%s3298_s1 + $0x4] ss:$12 sps:$4 sm:$0xff]   ;;  %v2360_v32 = vld [vmem:[%s3298_s1 + $0x16c] ss:$12 sps:$4 sm:$0xff]   ;;  %v2364_v34 = vld [vmem:[%s3298_s1 + $0x168] ss:$12 sps:$4 sm:$0xff]  }
   0xc   :  { %1104 = vmatpush1.bf16.msra.mxu1 %v2329_v11  ;;  %1062 = vmatprep.subr.bf16.mxu0 %v2330_v12  ;;  %v2356_v29 = vld [vmem:[%s3298_s1 + $0x184] ss:$12 sps:$4 sm:$0xff]   ;;  %v2362_v33 = vld [vmem:[%s3298_s1 + $0x2ec] ss:$12 sps:$4 sm:$0xff]   ;;  %v2365_v35 = vld [vmem:[%s3298_s1 + $0x2e8] ss:$12 sps:$4 sm:$0xff]  }
   0xd   :  { %1105 = vmatprep.subr.bf16.mxu1 %v2332_v13  ;;  %v2366_v36 = vld [vmem:[%s3298_s1 + $0x154] ss:$12 sps:$4 sm:$0xff]   ;;  %v2370_v38 = vld [vmem:[%s3298_s1 + $0x150] ss:$12 sps:$4 sm:$0xff]   ;;  %v2376_v42 = vld [vmem:[%s3298_s1 + $0x138] ss:$12 sps:$4 sm:$0xff]  }
   0xe   :  { %v2368_v37 = vld [vmem:[%s3298_s1 + $0x2d4] ss:$12 sps:$4 sm:$0xff]   ;;  %v2371_v39 = vld [vmem:[%s3298_s1 + $0x2d0] ss:$12 sps:$4 sm:$0xff]   ;;  %v2377_v43 = vld [vmem:[%s3298_s1 + $0x2b8] ss:$12 sps:$4 sm:$0xff]  }
   0xf   :  { %1063 = vmatpush1.bf16.msra.mxu0 %v2334_v14  ;;  %v2372_v40 = vld [vmem:[%s3298_s1 + $0x13c] ss:$12 sps:$4 sm:$0xff]   ;;  %v2378_v44 = vld [vmem:[%s3298_s1 + $0x124] ss:$12 sps:$4 sm:$0xff]   ;;  %v2382_v50 = vld [vmem:[%s3298_s1 + $0x120] ss:$12 sps:$4 sm:$0xff]  }
  0x10   :  { %1106 = vmatpush1.bf16.msra.mxu1 %v2335_v15  ;;  %1064 = vmatprep.subr.bf16.mxu0 %v2336_v16  ;;  %v2374_v41 = vld [vmem:[%s3298_s1 + $0x2bc] ss:$12 sps:$4 sm:$0xff]   ;;  %v2380_v45 = vld [vmem:[%s3298_s1 + $0x2a4] ss:$12 sps:$4 sm:$0xff]   ;;  %v2383_v51 = vld [vmem:[%s3298_s1 + $0x2a0] ss:$12 sps:$4 sm:$0xff]  }
  0x11   :  { %1107 = vmatprep.subr.bf16.mxu1 %v2338_v17  ;;  %v35_v46 = vld [vmem:[%s3297_s0 + $0x8] sm:$0xff]  ;;  %v42_v47 = vld [vmem:[%s3297_s0 + $0x40] sm:$0xff]  ;;  %v37_v48 = vld [vmem:[%s3297_s0 + $0x18] sm:$0xff] }
  0x12   :  { %v44_v49 = vld [vmem:[%s3297_s0 + $0x50] sm:$0xff]  ;;  %v2384_v52 = vld [vmem:[%s3298_s1 + $0x10c] ss:$12 sps:$4 sm:$0xff]   ;;  %v2789_v53 = vpack.c.bf16 %v42_v47, %v35_v46  ;;  %v2396_v62 = vld [vmem:[%s3298_s1 + $0xdc] ss:$12 sps:$4 sm:$0xff]  }
  0x13   :  { %1065 = vmatpush1.bf16.msra.mxu0 %v2340_v18  ;;  %v2791_v54 = vpack.c.bf16 %v44_v49, %v37_v48  ;;  %v2386_v55 = vld [vmem:[%s3298_s1 + $0x28c] ss:$12 sps:$4 sm:$0xff]   ;;  %v2388_v56 = vld [vmem:[%s3298_s1 + $0x108] ss:$12 sps:$4 sm:$0xff]   ;;  %v2394_v60 = vld [vmem:[%s3298_s1 + $0xf0] ss:$12 sps:$4 sm:$0xff]  }
  0x14   :  { %1108 = vmatpush1.bf16.msra.mxu1 %v2341_v19  ;;  %1066 = vmatprep.subr.bf16.mxu0 %v2342_v20  ;;  %v2389_v57 = vld [vmem:[%s3298_s1 + $0x288] ss:$12 sps:$4 sm:$0xff]   ;;  %v2395_v61 = vld [vmem:[%s3298_s1 + $0x270] ss:$12 sps:$4 sm:$0xff]   ;;  %v2400_v0 = vld [vmem:[%s3298_s1 + $0xd8] ss:$12 sps:$4 sm:$0xff]  }
  0x15   :  { %1109 = vmatprep.subr.bf16.mxu1 %v2344_v21  ;;  %1088 = vmatprep.mubr.bf16.mxu0 %v2789_v53  ;;  %v2390_v58 = vld [vmem:[%s3298_s1 + $0xf4] ss:$12 sps:$4 sm:$0xff]   ;;  %v2398_v63 = vld [vmem:[%s3298_s1 + $0x25c] ss:$12 sps:$4 sm:$0xff]   ;;  %v2401_v1 = vld [vmem:[%s3298_s1 + $0x258] ss:$12 sps:$4 sm:$0xff]  }
  0x16   :  { %1131 = vmatprep.mubr.bf16.mxu1 %v2791_v54  ;;  %v2392_v59 = vld [vmem:[%s3298_s1 + $0x274] ss:$12 sps:$4 sm:$0xff]   ;;  %v2402_v2 = vld [vmem:[%s3298_s1 + $0xc4] ss:$12 sps:$4 sm:$0xff]   ;;  %v41_v7 = vld [vmem:[%s3297_s0 + $0x38] sm:$0xff]  ;;  %v2574_v21 = vmov 0  }
  0x17   :  { %1067 = vmatpush1.bf16.msra.mxu0 %v2346_v22  ;;  %v2404_v3 = vld [vmem:[%s3298_s1 + $0x244] ss:$12 sps:$4 sm:$0xff]   ;;  %v2406_v4 = vld [vmem:[%s3298_s1 + $0xc0] ss:$12 sps:$4 sm:$0xff]   ;;  %v2408_v14 = vld [vmem:[%s3298_s1 + $0x3a8] ss:$12 sps:$4 sm:$0xff]  }
  0x18   :  { %1110 = vmatpush1.bf16.msra.mxu1 %v2347_v23  ;;  %1068 = vmatprep.subr.bf16.mxu0 %v2348_v24  ;;  %v2407_v5 = vld [vmem:[%s3298_s1 + $0x240] ss:$12 sps:$4 sm:$0xff]   ;;  %v36_v8 = vld [vmem:[%s3297_s0 + $0x10] sm:$0xff]  ;;  %v2420_v22 = vld [vmem:[%s3298_s1 + $0x37c] ss:$12 sps:$4 sm:$0xff]  }
  0x19   :  { %1111 = vmatprep.subr.bf16.mxu1 %v2350_v25  ;;  %v34_v6 = vld [vmem:[%s3297_s0] sm:$0xff]  ;;  %v43_v9 = vld [vmem:[%s3297_s0 + $0x48] sm:$0xff]  ;;  %v2417_v17 = vld [vmem:[%s3298_s1 + $0x170] ss:$12 sps:$4 sm:$0xff]  }
  0x1a   :  { %v2410_v10 = vld [vmem:[%s3298_s1 + $0x3ac] ss:$12 sps:$4 sm:$0xff]   ;;  %v2413_v11 = vld [vmem:[%s3298_s1 + $0x484] ss:$12 sps:$4 sm:$0xff]   ;;  %v2858_v12 = vpack.c.bf16 %v41_v7, %v34_v6  ;;  %v2860_v13 = vpack.c.bf16 %v43_v9, %v36_v8  ;;  %v2416_v16 = vld [vmem:[%s3298_s1 + $0x394] ss:$12 sps:$4 sm:$0xff]  }
  0x1b   :  { %1069 = vmatpush1.bf16.msra.mxu0 %v2352_v26  ;;  %v2411_v15 = vld [vmem:[%s3298_s1 + $0x480] ss:$12 sps:$4 sm:$0xff]   ;;  %v2414_v18 = vld [vmem:[%s3298_s1 + $0x390] ss:$12 sps:$4 sm:$0xff]   ;;  %v2418_v23 = vld [vmem:[%s3298_s1 + $0x378] ss:$12 sps:$4 sm:$0xff]  }
  0x1c   :  { %1112 = vmatpush1.bf16.msra.mxu1 %v2353_v27  ;;  %1070 = vmatprep.subr.bf16.mxu0 %v2354_v28  ;;  %v40_v19 = vld [vmem:[%s3297_s0 + $0x30] sm:$0xff]  ;;  %v47_v20 = vld [vmem:[%s3297_s0 + $0x68] sm:$0xff]  ;;  %v2422_v26 = vld [vmem:[%s3298_s1 + $0x158] ss:$12 sps:$4 sm:$0xff]  }
  0x1d   :  { %1113 = vmatprep.subr.bf16.mxu1 %v2356_v29  ;;  %v2891_v24 = vpack.c.bf16 %v47_v20, %v40_v19  ;;  %v2421_v25 = vld [vmem:[%s3298_s1 + $0xb0] ss:$12 sps:$4 sm:$0xff]   ;;  %v2423_v28 = vld [vmem:[%s3298_s1 + $0x360] ss:$12 sps:$4 sm:$0xff]   ;;  %v2426_v29 = vld [vmem:[%s3298_s1 + $0x98] ss:$12 sps:$4 sm:$0xff]  }
  0x1e   :  { %v2425_v27 = vld [vmem:[%s3298_s1 + $0x364] ss:$12 sps:$4 sm:$0xff]   ;;  %v2447_v46 = vld [vmem:[%s3298_s1 + $0xe0] ss:$12 sps:$4 sm:$0xff]   ;;  %v2448_v48 = vld [vmem:[%s3298_s1 + $0x468] ss:$12 sps:$4 sm:$0xff]  }
  0x1f   :  { %1071 = vmatpush1.bf16.msra.mxu0 %v2358_v30  ;;  %v2427_v30 = vld [vmem:[%s3298_s1 + $0x140] ss:$12 sps:$4 sm:$0xff]   ;;  %v2472_v6 = vld [vmem:[%s3298_s1 + $0x2a8] ss:$12 sps:$4 sm:$0xff]   ;;  %v2477_v9 = vld [vmem:[%s3298_s1 + $0x290] ss:$12 sps:$4 sm:$0xff]  }
  0x20   :  { %1114 = vmatpush1.bf16.msra.mxu1 %v2359_v31  ;;  %1072 = vmatprep.subr.bf16.mxu0 %v2360_v32  ;;  %v2430_v31 = vld [vmem:[%s3298_s1 + $0x34c] ss:$12 sps:$4 sm:$0xff]   ;;  %v2428_v32 = vld [vmem:[%s3298_s1 + $0x348] ss:$12 sps:$4 sm:$0xff]  }
  0x21   :  { %1115 = vmatprep.subr.bf16.mxu1 %v2362_v33  ;;  %v2431_v33 = vld [vmem:[%s3298_s1 + $0x80] ss:$12 sps:$4 sm:$0xff]   ;;  %v2476_v8 = vld [vmem:[%s3298_s1 + $0x1e8] ss:$12 sps:$4 sm:$0xff]   ;;  %v45_v19 = vld [vmem:[%s3297_s0 + $0x58] sm:$0xff] }
  0x22   :  { %v2450_v47 = vld [vmem:[%s3298_s1 + $0x46c] ss:$12 sps:$4 sm:$0xff]   ;;  %v2475_v7 = vld [vmem:[%s3298_s1 + $0x3f4] ss:$12 sps:$4 sm:$0xff]  }
  0x23   :  { %1073 = vmatpush2.bf16.msra.mxu0 %v2364_v34  ;;  %v2432_v34 = vld [vmem:[%s3298_s1 + $0x128] ss:$12 sps:$4 sm:$0xff]   ;;  %v2451_v49 = vld [vmem:[%s3298_s1 + $0x20] ss:$12 sps:$4 sm:$0xff]  }
  0x24   :  { %1116 = vmatpush2.bf16.msra.mxu1 %v2365_v35  ;;  %1074 = vmatprep.subr.bf16.mxu0 %v2366_v36  ;;  %v2435_v35 = vld [vmem:[%s3298_s1 + $0x334] ss:$12 sps:$4 sm:$0xff]   ;;  %v2433_v36 = vld [vmem:[%s3298_s1 + $0x330] ss:$12 sps:$4 sm:$0xff]  }
  0x25   :  { %1117 = vmatprep.subr.bf16.mxu1 %v2368_v37  ;;  %v2436_v37 = vld [vmem:[%s3298_s1 + $0x68] ss:$12 sps:$4 sm:$0xff]   ;;  %v2487_v20 = vld [vmem:[%s3298_s1 + $0x260] ss:$12 sps:$4 sm:$0xff]  }
  0x27   :  { %1075 = vmatpush2.bf16.msra.mxu0 %v2370_v38  ;;  %v2437_v38 = vld [vmem:[%s3298_s1 + $0x110] ss:$12 sps:$4 sm:$0xff]  }
  0x28   :  { %1118 = vmatpush2.bf16.msra.mxu1 %v2371_v39  ;;  %1076 = vmatprep.subr.bf16.mxu0 %v2372_v40  ;;  %v2440_v39 = vld [vmem:[%s3298_s1 + $0x31c] ss:$12 sps:$4 sm:$0xff]   ;;  %v2438_v40 = vld [vmem:[%s3298_s1 + $0x318] ss:$12 sps:$4 sm:$0xff]  }
  0x29   :  { %1119 = vmatprep.subr.bf16.mxu1 %v2374_v41  ;;  %v2441_v41 = vld [vmem:[%s3298_s1 + $0x50] ss:$12 sps:$4 sm:$0xff]  }
  0x2b   :  { %1077 = vmatpush2.bf16.msra.mxu0 %v2376_v42  ;;  %v2442_v42 = vld [vmem:[%s3298_s1 + $0xf8] ss:$12 sps:$4 sm:$0xff]  }
  0x2c   :  { %1120 = vmatpush2.bf16.msra.mxu1 %v2377_v43  ;;  %1078 = vmatprep.subr.bf16.mxu0 %v2378_v44  ;;  %v2445_v43 = vld [vmem:[%s3298_s1 + $0x304] ss:$12 sps:$4 sm:$0xff]   ;;  %v2443_v44 = vld [vmem:[%s3298_s1 + $0x300] ss:$12 sps:$4 sm:$0xff]  }
  0x2d   :  { %1121 = vmatprep.subr.bf16.mxu1 %v2380_v45  ;;  %v2446_v45 = vld [vmem:[%s3298_s1 + $0x38] ss:$12 sps:$4 sm:$0xff]  }
  0x2f   :  { %1079 = vmatpush2.bf16.msra.mxu0 %v2382_v50  ;;  %v2452_v50 = vld [vmem:[%s3298_s1 + $0xc8] ss:$12 sps:$4 sm:$0xff]  }
  0x30   :  { %1122 = vmatpush2.bf16.msra.mxu1 %v2383_v51  ;;  %1080 = vmatprep.subr.bf16.mxu0 %v2384_v52  ;;  %v2455_v51 = vld [vmem:[%s3298_s1 + $0x454] ss:$12 sps:$4 sm:$0xff]   ;;  %v39_v52 = vld [vmem:[%s3297_s0 + $0x28] sm:$0xff] }
  0x31   :  { %1123 = vmatprep.subr.bf16.mxu1 %v2386_v55  ;;  %v2453_v55 = vld [vmem:[%s3298_s1 + $0x450] ss:$12 sps:$4 sm:$0xff]  }
  0x33   :  { %1081 = vmatpush2.bf16.msra.mxu0 %v2388_v56 }
  0x34   :  { %1124 = vmatpush2.bf16.msra.mxu1 %v2389_v57  ;;  %1082 = vmatprep.subr.bf16.mxu0 %v2390_v58  ;;  %v2456_v57 = vld [vmem:[%s3298_s1 + $0x8] ss:$12 sps:$4 sm:$0xff]   ;;  %v2457_v58 = vld [vmem:[%s3298_s1 + $0x2f0] ss:$12 sps:$4 sm:$0xff]  }
  0x35   :  { %1125 = vmatprep.subr.bf16.mxu1 %v2392_v59  ;;  %v2460_v59 = vld [vmem:[%s3298_s1 + $0x43c] ss:$12 sps:$4 sm:$0xff]  }
  0x37   :  { %1083 = vmatpush2.bf16.msra.mxu0 %v2394_v60  ;;  %v2458_v60 = vld [vmem:[%s3298_s1 + $0x438] ss:$12 sps:$4 sm:$0xff]  }
  0x38   :  { %1126 = vmatpush2.bf16.msra.mxu1 %v2395_v61  ;;  %1084 = vmatprep.subr.bf16.mxu0 %v2396_v62  ;;  %v2461_v61 = vld [vmem:[%s3298_s1 + $0x230] ss:$12 sps:$4 sm:$0xff]   ;;  %v2462_v62 = vld [vmem:[%s3298_s1 + $0x2d8] ss:$12 sps:$4 sm:$0xff]  }
  0x39   :  { %1127 = vmatprep.subr.bf16.mxu1 %v2398_v63  ;;  %v2465_v63 = vld [vmem:[%s3298_s1 + $0x424] ss:$12 sps:$4 sm:$0xff]  }
  0x3b   :  { %1085 = vmatpush2.bf16.msra.mxu0 %v2400_v0  ;;  %v2463_v0 = vld [vmem:[%s3298_s1 + $0x420] ss:$12 sps:$4 sm:$0xff]  }
  0x3c   :  { %1128 = vmatpush2.bf16.msra.mxu1 %v2401_v1  ;;  %1086 = vmatprep.subr.bf16.mxu0 %v2402_v2  ;;  %v2466_v1 = vld [vmem:[%s3298_s1 + $0x218] ss:$12 sps:$4 sm:$0xff]   ;;  %v2467_v2 = vld [vmem:[%s3298_s1 + $0x2c0] ss:$12 sps:$4 sm:$0xff]  }
  0x3d   :  { %1129 = vmatprep.subr.bf16.mxu1 %v2404_v3  ;;  %v2470_v3 = vld [vmem:[%s3298_s1 + $0x40c] ss:$12 sps:$4 sm:$0xff]  }
  0x3f   :  { %1087 = vmatpush2.bf16.msra.mxu0 %v2406_v4  ;;  %v2468_v4 = vld [vmem:[%s3298_s1 + $0x408] ss:$12 sps:$4 sm:$0xff]  }
  0x40   :  { %1130 = vmatpush2.bf16.msra.mxu1 %v2407_v5  ;;  %1142 = vmatprep.subr.bf16.mxu0 %v2410_v10  ;;  %v2471_v5 = vld [vmem:[%s3298_s1 + $0x200] ss:$12 sps:$4 sm:$0xff]   ;;  %v2480_v10 = vld [vmem:[%s3298_s1 + $0x3dc] ss:$12 sps:$4 sm:$0xff]  }
  0x41   :  { %1199 = vmatprep.subr.bf16.mxu1 %v2413_v11  ;;  %v2478_v11 = vld [vmem:[%s3298_s1 + $0x3d8] ss:$12 sps:$4 sm:$0xff]  }
  0x42   :  { %1089 = vmatmul.mubr.bf16.vlgmr.msra.gmra.mxu0 %v2858_v12 }
  0x43   :  { %1132 = vmatmul.mubr.bf16.vlgmr.msra.gmra.mxu1 %v2860_v13  ;;  %1143 = vmatpush1.bf16.msra.mxu0 %v2408_v14  ;;  %v2482_v14 = vld [vmem:[%s3298_s1 + $0x278] ss:$12 sps:$4 sm:$0xff]  }
  0x44   :  { %1200 = vmatpush1.bf16.msra.mxu1 %v2411_v15  ;;  %1144 = vmatprep.subr.bf16.mxu0 %v2416_v16  ;;  %v2485_v15 = vld [vmem:[%s3298_s1 + $0x3c4] ss:$12 sps:$4 sm:$0xff]   ;;  %v2483_v16 = vld [vmem:[%s3298_s1 + $0x3c0] ss:$12 sps:$4 sm:$0xff]  }
  0x45   :  { %1217 = vmatprep.mubr.bf16.mxu1 %v2574_v21  ;;  %2135 = vmatprep.subr.bf16.mxu1 %v2417_v17  ;;  %v2486_v17 = vld [vmem:[%s3298_s1 + $0x1b8] ss:$12 sps:$4 sm:$0xff]   ;;  %v2489_v21 = vld [vmem:[%s3298_s1 + $0x470] ss:$12 sps:$4 sm:$0xff]  }
  0x47   :  { %1145 = vmatpush1.bf16.msra.mxu0 %v2414_v18  ;;  %v38_v18 = vld [vmem:[%s3297_s0 + $0x20] sm:$0xff] }
  0x48   :  { %1146 = vmatprep.subr.bf16.mxu0 %v2420_v22  ;;  %v2488_v22 = vld [vmem:[%s3298_s1 + $0x1a0] ss:$12 sps:$4 sm:$0xff]  }
  0x4b   :  { %2084 = vmatmul.mubr.msk.bf16.vlgmr.msra.gmra.mxu1 %vm1052_vm0, %v2891_v24  ;;  %1147 = vmatpush1.bf16.msra.mxu0 %v2418_v23  ;;  %v2490_v23 = vld [vmem:[%s3298_s1 + $0x3b0] ss:$12 sps:$4 sm:$0xff]  }
  0x4c   :  { %2136 = vmatpush3.bf16.msra.mxu1 %v2421_v25  ;;  %1148 = vmatprep.subr.bf16.mxu0 %v2425_v27  ;;  %v52_v25 = vpack.c.bf16 %v45_v19, %v38_v18  ;;  %v2493_v27 = vld [vmem:[%s3298_s1 + $0x458] ss:$12 sps:$4 sm:$0xff]  }
  0x4d   :  { %2137 = vmatprep.subr.bf16.mxu1 %v2422_v26  ;;  %1260 = vmatprep.mubr.bf16.mxu1 %v2789_v53  ;;  %v46_v53 = vld [vmem:[%s3297_s0 + $0x60] sm:$0xff]  ;;  %v2491_v26 = vld [vmem:[%s3298_s1 + $0x248] ss:$12 sps:$4 sm:$0xff]  }
  0x4e   :  { %v2986_v56 = vpack.c.bf16 %v46_v53, %v39_v52 }
  0x4f   :  { %1149 = vmatpush1.bf16.msra.mxu0 %v2423_v28  ;;  %v2492_v28 = vld [vmem:[%s3298_s1 + $0x188] ss:$12 sps:$4 sm:$0xff]  }
  0x50   :  { %2138 = vmatpush3.bf16.msra.mxu1 %v2426_v29  ;;  %1150 = vmatprep.subr.bf16.mxu0 %v2430_v31  ;;  %v2494_v29 = vld [vmem:[%s3298_s1 + $0x398] ss:$12 sps:$4 sm:$0xff]   ;;  %v2496_v31 = vld [vmem:[%s3298_s1 + $0x380] ss:$12 sps:$4 sm:$0xff]  }
  0x51   :  { %2139 = vmatprep.subr.bf16.mxu1 %v2427_v30  ;;  %1174 = vmatprep.mubr.bf16.mxu0 %v2986_v56  ;;  %v2495_v30 = vld [vmem:[%s3298_s1 + $0x440] ss:$12 sps:$4 sm:$0xff]  }
  0x53   :  { %1151 = vmatpush1.bf16.msra.mxu0 %v2428_v32  ;;  %v2507_v32 = vld [vmem:[%s3298_s1 + $0x488] ss:$12 sps:$4 sm:$0xff]  }
  0x54   :  { %2140 = vmatpush3.bf16.msra.mxu1 %v2431_v33  ;;  %1152 = vmatprep.subr.bf16.mxu0 %v2435_v35  ;;  %v2497_v33 = vld [vmem:[%s3298_s1 + $0x428] ss:$12 sps:$4 sm:$0xff]  }
  0x55   :  { %2141 = vmatprep.subr.bf16.mxu1 %v2432_v34  ;;  %v2575_v34 = vmov 0.0   ;;  %v2498_v35 = vld [vmem:[%s3298_s1 + $0x368] ss:$12 sps:$4 sm:$0xff]  }
  0x57   :  { %1153 = vmatpush1.bf16.msra.mxu0 %v2433_v36  ;;  %v2499_v36 = vld [vmem:[%s3298_s1 + $0x410] ss:$12 sps:$4 sm:$0xff]  }
  0x58   :  { %2142 = vmatpush3.bf16.msra.mxu1 %v2436_v37  ;;  %1154 = vmatprep.subr.bf16.mxu0 %v2440_v39 }
  0x59   :  { %2143 = vmatprep.subr.bf16.mxu1 %v2437_v38 }
  0x5b   :  { %1155 = vmatpush1.bf16.msra.mxu0 %v2438_v40 }
  0x5c   :  { %2144 = vmatpush3.bf16.msra.mxu1 %v2441_v41  ;;  %1156 = vmatprep.subr.bf16.mxu0 %v2445_v43 }
  0x5d   :  { %2145 = vmatprep.subr.bf16.mxu1 %v2442_v42 }
  0x5f   :  { %1157 = vmatpush1.bf16.msra.mxu0 %v2443_v44 }
  0x60   :  { %2146 = vmatpush3.bf16.msra.mxu1 %v2446_v45  ;;  %1158 = vmatprep.subr.bf16.mxu0 %v2450_v47 }
  0x61   :  { %2147 = vmatprep.subr.bf16.mxu1 %v2447_v46 }
  0x63   :  { %1159 = vmatpush2.bf16.msra.mxu0 %v2448_v48 }
  0x64   :  { %2148 = vmatpush3.bf16.msra.mxu1 %v2451_v49  ;;  %1160 = vmatprep.subr.bf16.mxu0 %v2455_v51 }
  0x65   :  { %2149 = vmatprep.subr.bf16.mxu1 %v2452_v50 }
  0x67   :  { %1161 = vmatpush2.bf16.msra.mxu0 %v2453_v55 }
  0x68   :  { %2150 = vmatpush3.bf16.msra.mxu1 %v2456_v57  ;;  %1162 = vmatprep.subr.bf16.mxu0 %v2460_v59 }
  0x69   :  { %2157 = vmatprep.subr.bf16.mxu1 %v2457_v58 }
  0x6b   :  { %1261 = vmatmul.mubr.bf16.vlgmr.msra.gmra.mxu1 %v2858_v12  ;;  %1163 = vmatpush2.bf16.msra.mxu0 %v2458_v60  ;;  %v2481_v12 = vld [vmem:[%s3298_s1 + $0x1d0] ss:$12 sps:$4 sm:$0xff]  }
  0x6c   :  { %2158 = vmatpush3.bf16.msra.mxu1 %v2461_v61  ;;  %1164 = vmatprep.subr.bf16.mxu0 %v2465_v63 }
  0x6d   :  { %2159 = vmatprep.subr.bf16.mxu1 %v2462_v62  ;;  %1301 = vmatprep.mubr.bf16.mxu1 %v2791_v54  ;;  %v2473_v54 = vld [vmem:[%s3298_s1 + $0x3f0] ss:$12 sps:$4 sm:$0xff]  }
  0x6f   :  { %1165 = vmatpush2.bf16.msra.mxu0 %v2463_v0 }
  0x70   :  { %2160 = vmatpush3.bf16.msra.mxu1 %v2466_v1  ;;  %1166 = vmatprep.subr.bf16.mxu0 %v2470_v3 }
  0x71   :  { %2161 = vmatprep.subr.bf16.mxu1 %v2467_v2 }
  0x73   :  { %1167 = vmatpush2.bf16.msra.mxu0 %v2468_v4 }
  0x74   :  { %2162 = vmatpush3.bf16.msra.mxu1 %v2471_v5  ;;  %1168 = vmatprep.subr.bf16.mxu0 %v2475_v7 }
  0x75   :  { %2163 = vmatprep.subr.bf16.mxu1 %v2472_v6 }
  0x77   :  { %1169 = vmatpush2.bf16.msra.mxu0 %v2473_v54 }
  0x78   :  { %2164 = vmatpush3.bf16.msra.mxu1 %v2476_v8  ;;  %1170 = vmatprep.subr.bf16.mxu0 %v2480_v10 }
  0x79   :  { %2165 = vmatprep.subr.bf16.mxu1 %v2477_v9 }
  0x7b   :  { %1171 = vmatpush2.bf16.msra.mxu0 %v2478_v11 }
  0x7c   :  { %2166 = vmatpush3.bf16.msra.mxu1 %v2481_v12  ;;  %1172 = vmatprep.subr.bf16.mxu0 %v2485_v15 }
  0x7d   :  { %2167 = vmatprep.subr.bf16.mxu1 %v2482_v14 }
  0x7f   :  { %1173 = vmatpush2.bf16.msra.mxu0 %v2483_v16 }
  0x80   :  { %2168 = vmatpush3.bf16.msra.mxu1 %v2486_v17  ;;  %2179 = vmatprep.subr.bf16.mxu0 %v2489_v21 }
  0x81   :  { %2169 = vmatprep.subr.bf16.mxu1 %v2487_v20 }
  0x82   :  { %1175 = vmatmul.mubr.bf16.vlgmr.msra.gmra.mxu0 %v52_v25 }
  0x83   :  { %2180 = vmatpush3.bf16.msra.mxu0 %v2490_v23  ;;  %1342 = vmatprep.mubr.bf16.mxu0 %v2986_v56 }
  0x84   :  { %2170 = vmatpush3.bf16.msra.mxu1 %v2488_v22  ;;  %2181 = vmatprep.subr.bf16.mxu0 %v2493_v27 }
  0x85   :  { %2171 = vmatprep.subr.bf16.mxu1 %v2491_v26 }
  0x87   :  { %2182 = vmatpush3.bf16.msra.mxu0 %v2494_v29 }
  0x88   :  { %2172 = vmatpush3.bf16.msra.mxu1 %v2492_v28  ;;  %2183 = vmatprep.subr.bf16.mxu0 %v2495_v30 }
  0x89   :  { %2248 = vmatprep.subr.bf16.mxu1 %v2575_v34 }
  0x8b   :  { %1302 = vmatmul.mubr.bf16.vlgmr.msra.gmra.mxu1 %v2860_v13  ;;  %2184 = vmatpush3.bf16.msra.mxu0 %v2496_v31 }
  0x8c   :  { %2249 = vmatpush3.bf16.msra.mxu1 %v2507_v32  ;;  %2185 = vmatprep.subr.bf16.mxu0 %v2497_v33 }
  0x8d   :  { %2250 = vmatprep.mubr.msk.bf16.mxu1 %vm2576_vm1, %v2575_v34 }
  0x8e   :  { %14 = vsyncpa [#allocation3], 0  ;;  %v2500_v37 = vld [vmem:[%s3298_s1 + $0x350] ss:$12 sps:$4 sm:$0xff]   ;;  %v2501_v13 = vld [vmem:[%s3298_s1 + $0x3f8] ss:$12 sps:$4 sm:$0xff]   ;;  %v253_v4 = vlaneseq }
  0x8f   :  { %2186 = vmatpush3.bf16.msra.mxu0 %v2498_v35  ;;  %v2508_v38 = vld [vmem:[%s3300_s3 + $0x78] sm:$0xff]   ;;  %v2510_v40 = vld [vmem:[%s3300_s3 + $0x70] sm:$0xff]   ;;  %v2503_v43 = vld [vmem:[%s3298_s1 + $0x3e0] ss:$12 sps:$4 sm:$0xff]   ;;  %vm1568_vm2 = vcmask 523264  }
  0x90   :  { %2187 = vmatprep.subr.bf16.mxu0 %v2499_v36  ;;  %v2509_v39 = vld [vmem:[%s3300_s3 + $0x38] sm:$0xff]   ;;  %2203 = vmatprep.subr.bf16.mxu1 %v2508_v38  ;;  %v2511_v42 = vld [vmem:[%s3300_s3 + $0x30] sm:$0xff]   ;;  %v2512_v46 = vld [vmem:[%s3300_s3 + $0x68] sm:$0xff]   ;;  %v254_v6 = vshrl.u32 %v253_v4, 7 }
  0x91   :  { %v2502_v41 = vld [vmem:[%s3298_s1 + $0x338] ss:$12 sps:$4 sm:$0xff]   ;;  %v2505_v44 = vld [vmem:[%s3298_s1 + $0x3c8] ss:$12 sps:$4 sm:$0xff]   ;;  %v251_v9 = vld [vmem:[%s3299_s2] sm:$0x7] }
  0x92   :  { %v2506_v45 = vld [vmem:[%s3298_s1 + $0x308] ss:$12 sps:$4 sm:$0xff]   ;;  %v2514_v48 = vld [vmem:[%s3300_s3 + $0x60] sm:$0xff]   ;;  %v2516_v50 = vld [vmem:[%s3300_s3 + $0x58] sm:$0xff]   ;;  %v259_v8 = vsub.s32 1, %v254_v6  ;;  %v255_v10 = vsub.s32 0, %v254_v6 }
  0x93   :  { %2251 = vmatmul.mubr.msk.bf16.vlgmr.msra.gmra.mxu1 %vm1052_vm0, %v2891_v24  ;;  %2188 = vmatpush3.bf16.msra.mxu0 %v2500_v37  ;;  %v2504_v24 = vld [vmem:[%s3298_s1 + $0x320] ss:$12 sps:$4 sm:$0xff]   ;;  %v2517_v51 = vld [vmem:[%s3300_s3 + $0x18] sm:$0xff]   ;;  %v2518_v52 = vld [vmem:[%s3300_s3 + $0x50] sm:$0xff]  }
  0x94   :  { %2204 = vmatpush3.bf16.msra.mxu1 %v2509_v39  ;;  %2189 = vmatprep.subr.bf16.mxu0 %v2501_v13  ;;  %v2513_v47 = vld [vmem:[%s3300_s3 + $0x28] sm:$0xff]   ;;  %v2515_v49 = vld [vmem:[%s3300_s3 + $0x20] sm:$0xff]   ;;  %v2519_v53 = vld [vmem:[%s3300_s3 + $0x10] sm:$0xff]   ;;  %v260_v14 = vrot.slane %v251_v9, %v259_v8  ;;  %v256_v15 = vrot.slane %v251_v9, %v255_v10 }
  0x95   :  { %2205 = vmatprep.subr.bf16.mxu1 %v2510_v40  ;;  %v2520_v55 = vld [vmem:[%s3300_s3 + $0x48] sm:$0xff]   ;;  %v2522_v57 = vld [vmem:[%s3300_s3 + $0x40] sm:$0xff]   ;;  %v2524_v59 = vld [vmem:[%s3300_s3 + $0x98] sm:$0xff]  }
  0x96   :  { %v2521_v56 = vld [vmem:[%s3300_s3 + $0x8] sm:$0xff]   ;;  %v2523_v58 = vld [vmem:[%s3300_s3] sm:$0xff]   ;;  %v2525_v60 = vld [vmem:[%s3300_s3 + $0x90] sm:$0xff]  }
  0x97   :  { %2190 = vmatpush3.bf16.msra.mxu0 %v2502_v41  ;;  %v2526_v61 = vld [vmem:[%s3300_s3 + $0x88] sm:$0xff]   ;;  %v2527_v62 = vld [vmem:[%s3300_s3 + $0x80] sm:$0xff]  }
  0x98   :  { %2206 = vmatpush3.bf16.msra.mxu1 %v2511_v42  ;;  %2191 = vmatprep.subr.bf16.mxu0 %v2503_v43 }
  0x99   :  { %2207 = vmatprep.subr.bf16.mxu1 %v2512_v46 }
  0x9b   :  { %2192 = vmatpush3.bf16.msra.mxu0 %v2504_v24 }
  0x9c   :  { %2193 = vmatprep.subr.bf16.mxu0 %v2505_v44  ;;  %2208 = vmatpush3.bf16.msra.mxu1 %v2513_v47 }
  0x9d   :  { %2209 = vmatprep.subr.bf16.mxu1 %v2514_v48 }
  0x9f   :  { %2194 = vmatpush3.bf16.msra.mxu0 %v2506_v45 }
  0xa0   :  { %2254 = vmatprep.subr.bf16.mxu0 %v2575_v34  ;;  %2210 = vmatpush3.bf16.msra.mxu1 %v2515_v49 }
  0xa1   :  { %2211 = vmatprep.subr.bf16.mxu1 %v2516_v50 }
  0xa2   :  { %1343 = vmatmul.mubr.bf16.vlgmr.msra.gmra.mxu0 %v52_v25 }
  0xa3   :  { %2262 = vmatprep.mubr.msk.bf16.mxu0 %vm2576_vm1, %v2575_v34  ;;  %2255 = vmatpush3.bf16.msra.mxu0 %v2524_v59 }
  0xa4   :  { %2212 = vmatpush3.bf16.msra.mxu1 %v2517_v51  ;;  %2256 = vmatprep.subr.bf16.mxu0 %v2575_v34 }
  0xa5   :  { %2213 = vmatprep.subr.bf16.mxu1 %v2518_v52 }
  0xa7   :  { %2257 = vmatpush3.bf16.msra.mxu0 %v2525_v60 }
  0xa8   :  { %2214 = vmatpush3.bf16.msra.mxu1 %v2519_v53  ;;  %2258 = vmatprep.subr.bf16.mxu0 %v2575_v34 }
  0xa9   :  { %2215 = vmatprep.subr.bf16.mxu1 %v2520_v55 }
  0xab   :  { %2259 = vmatpush3.bf16.msra.mxu0 %v2526_v61 }
  0xac   :  { %2216 = vmatpush3.bf16.msra.mxu1 %v2521_v56  ;;  %2260 = vmatprep.subr.bf16.mxu0 %v2575_v34 }
  0xad   :  { %2217 = vmatprep.subr.bf16.mxu1 %v2522_v57  ;;  %v263_v57 = vsub.s32 2, %v254_v6 }
  0xaf   :  { %2261 = vmatpush3.bf16.msra.mxu0 %v2527_v62 }
  0xb0   :  { %2218 = vmatpush3.bf16.msra.mxu1 %v2523_v58  ;;  %2266 = vmatprep.subr.bf16.mxu0 %v2575_v34  ;;  %v264_v58 = vrot.slane %v251_v9, %v263_v57 }
  0xb1   :  { %2286 = vmatprep.subr.bf16.mxu1 %v2575_v34 }
 0x102   :  { %v1090_v7 = vpop.f32.mrf.mxu0 }
 0x103   :  { %v1133_v63 = vpop.f32.mrf.mxu1  ;;  %v1091_v19 = vadd.f32 %v1090_v7, %v256_v15 }
 0x104   :  { %v1092_v11 = vpop.f32.mrf.mxu0 }
 0x105   :  { %v1135_v0 = vpop.f32.mrf.mxu1  ;;  %v1093_v18 = vadd.f32 %v1092_v11, %v260_v14  ;;  %v1134_v27 = vadd.f32 %v1133_v63, %v1091_v19  ;;  %v2530_v19 = vld [vmem:[%s3302_s5 + $0x28] sm:$0xff]  }
 0x106   :  { %v1094_v16 = vpop.f32.mrf.mxu0 }
 0x107   :  { %v1137_v1 = vpop.f32.mrf.mxu1  ;;  %v1095_v22 = vadd.f32 %v1094_v16, %v256_v15  ;;  %v1136_v25 = vadd.f32 %v1135_v0, %v1093_v18  ;;  %v2529_v18 = vld [vmem:[%s3302_s5 + $0x30] sm:$0xff]  }
 0x108   :  { %v1096_v20 = vpop.f32.mrf.mxu0 }
 0x109   :  { %v1139_v2 = vpop.f32.mrf.mxu1  ;;  %v1097_v26 = vadd.f32 %v1096_v20, %v260_v14  ;;  %v1138_v30 = vadd.f32 %v1137_v1, %v1095_v22  ;;  %v2531_v20 = vld [vmem:[%s3302_s5 + $0x20] sm:$0xff]   ;;  %v2533_v22 = vld [vmem:[%s3302_s5 + $0x10] sm:$0xff]  }
 0x10b   :  { %v1219_v3 = vpop.f32.mrf.mxu1  ;;  %v1140_v35 = vadd.f32 %v1139_v2, %v1097_v26  ;;  %v2536_v26 = vld [vmem:[%s3304_s7 + $0x38] sm:$0xff]  }
 0x10d   :  { %v1221_v5 = vpop.f32.mrf.mxu1 }
 0x10f   :  { %v1223_v54 = vpop.f32.mrf.mxu1 }
 0x111   :  { %v1225_v12 = vpop.f32.mrf.mxu1 }
 0x12b   :  { %v2151_v17 = vpop.f32.mrf.mxu1 }
 0x12d   :  { %v2152_v21 = vpop.f32.mrf.mxu1 }
 0x12e   :  { %v2153_v59 = vadd.f32 %v2152_v21, %v2151_v17  ;;  %v2528_v17 = vld [vmem:[%s3302_s5 + $0x38] sm:$0xff]  }
 0x12f   :  { %v2154_v28 = vpop.f32.mrf.mxu1  ;;  %v2532_v21 = vld [vmem:[%s3302_s5 + $0x18] sm:$0xff]  }
 0x130   :  { %v1263_v62 = vadd.f32 %v2153_v59, %v264_v58 }
 0x131   :  { %v2155_v37 = vpop.f32.mrf.mxu1 }
 0x132   :  { %v2156_v63 = vadd.f32 %v2155_v37, %v2154_v28  ;;  %v2538_v28 = vld [vmem:[%s3304_s7 + $0x28] sm:$0xff]   ;;  %v2086_v37 = vld [vmem:[%s3301_s4] ss:$0 sm:$0xff] }
 0x134   :  { %v1266_v7 = vadd.f32 %v2156_v63, %v264_v58 }
 0x142   :  { %v1176_v23 = vpop.f32.mrf.mxu0 }
 0x143   :  { %v1177_v32 = vadd.f32 %v1176_v23, %v1134_v27  ;;  %v2534_v23 = vld [vmem:[%s3302_s5 + $0x8] sm:$0xff]   ;;  %v2537_v27 = vld [vmem:[%s3304_s7 + $0x30] sm:$0xff]  }
 0x144   :  { %v1178_v29 = vpop.f32.mrf.mxu0 }
 0x145   :  { %v1179_v31 = vadd.f32 %v1178_v29, %v1136_v25  ;;  %v1220_v41 = vadd.f32 %v1219_v3, %v1177_v32  ;;  %v2535_v25 = vld [vmem:[%s3302_s5] sm:$0xff]  }
 0x146   :  { %v1180_v33 = vpop.f32.mrf.mxu0  ;;  %v2539_v29 = vld [vmem:[%s3304_s7 + $0x20] sm:$0xff]  }
 0x147   :  { %v1181_v36 = vadd.f32 %v1180_v33, %v1138_v30  ;;  %v1222_v38 = vadd.f32 %v1221_v5, %v1179_v31  ;;  %v1392_v47 = vmax.f32 %v1220_v41, 0.0  ;;  %v2540_v30 = vld [vmem:[%s3304_s7 + $0x18] sm:$0xff]  }
 0x148   :  { %v1182_v13 = vpop.f32.mrf.mxu0 }
 0x149   :  { %v1224_v39 = vadd.f32 %v1223_v54, %v1181_v36  ;;  %v1183_v40 = vadd.f32 %v1182_v13, %v1140_v35  ;;  %v1393_v45 = vmax.f32 %v1222_v38, 0.0 }
 0x14b   :  { %v2173_v42 = vpop.f32.mrf.mxu1  ;;  %v1226_v43 = vadd.f32 %v1225_v12, %v1183_v40  ;;  %v1395_v24 = vmax.f32 %v1224_v39, 0.0 }
 0x14d   :  { %v2174_v44 = vpop.f32.mrf.mxu1  ;;  %v1396_v46 = vmax.f32 %v1226_v43, 0.0  ;;  %v1398_v50 = vpack.c.bf16 %v1395_v24, %v1392_v47 }
 0x14e   :  { %v2175_v60 = vadd.f32 %v2174_v44, %v2173_v42 }
 0x14f   :  { %v2176_v48 = vpop.f32.mrf.mxu1  ;;  %v1399_v49 = vpack.c.bf16 %v1396_v46, %v1393_v45 }
 0x150   :  { %v1304_v1 = vadd.f32 %v2175_v60, %v1263_v62  ;;  %v2117_v62 = vld [vmem:[%s3305_s8] ss:$0 sm:$0xff] }
 0x151   :  { %v2177_v51 = vpop.f32.mrf.mxu1  ;;  %1604 = vmatprep.mubr.bf16.mxu1 %v1399_v49  ;;  %v2542_v49 = vld [vmem:[%s3304_s7 + $0x8] sm:$0xff]  }
 0x152   :  { %1605 = vmatmul.mubr.bf16.vlgmr.msra.gmra.mxu1 %v1398_v50  ;;  %v2178_v2 = vadd.f32 %v2177_v51, %v2176_v48  ;;  %v2541_v48 = vld [vmem:[%s3304_s7 + $0x10] sm:$0xff]   ;;  %v2543_v50 = vld [vmem:[%s3304_s7] sm:$0xff]  }
 0x153   :  { %v1385_v52 = vpop.f32.mrf.mxu1  ;;  %2302 = vmatprep.mubr.msk.bf16.mxu1 %vm2576_vm1, %v2575_v34  ;;  %2287 = vmatpush3.bf16.msra.mxu1 %v2536_v26  ;;  %v2108_v51 = vld [vmem:[%s3303_s6] ss:$0 sm:$0xff]  ;;  %s2577_s6 = smov [#allocation2]  }
 0x154   :  { %v1307_v10 = vadd.f32 %v2178_v2, %v1266_v7  ;;  %2288 = vmatprep.subr.bf16.mxu1 %v2575_v34  ;;  %s1926_s7 = sshll.u32 %s2577_s6, 4  ;;  %s1927_s7 = int_to_ptr.vmem [resolvable:$true] %s1926_s7 }
 0x155   :  { %v2252_v53 = vpop.f32.mrf.mxu1  ;;  %s2552_s8 = scalar_lea.vmem %s1927_s7, 128  ;;  %p2557_p1 = scmp.lt.s32.totalorder %s1927_s7, %s1927_s7 }
 0x156   :  { %p2553_p0 = scmp.ne.s32.totalorder %s1927_s7, %s2552_s8  ;;  %p2558_p2 = scmp.lt.s32.totalorder %s2552_s8, %s2552_s8 }
 0x157   :  { %v1388_v55 = vpop.f32.mrf.mxu1  ;;  %2289 = vmatpush3.bf16.msra.mxu1 %v2537_v27 }
 0x158   :  { %2290 = vmatprep.subr.bf16.mxu1 %v2575_v34  ;;  %p2559_p3 = por %p2558_p2, %p2557_p1 }
 0x159   :  { %v2253_v56 = vpop.f32.mrf.mxu1 }
 0x15a   :  { %p2560_p4 = pnand %p2559_p3, %p2553_p0 }
 0x15b   :  { %2291 = vmatpush3.bf16.msra.mxu1 %v2538_v28 }
 0x15c   :  { %2292 = vmatprep.subr.bf16.mxu1 %v2575_v34 }
 0x15f   :  { %2293 = vmatpush3.bf16.msra.mxu1 %v2539_v29 }
 0x160   :  { %2294 = vmatprep.subr.bf16.mxu1 %v2575_v34 }
 0x162   :  { %v2195_v61 = vpop.f32.mrf.mxu0 }
 0x163   :  { %2295 = vmatpush3.bf16.msra.mxu1 %v2540_v30 }
 0x164   :  { %v2196_v0 = vpop.f32.mrf.mxu0  ;;  %2296 = vmatprep.subr.bf16.mxu1 %v2575_v34 }
 0x165   :  { %v2197_v3 = vadd.f32 %v2196_v0, %v2195_v61 }
 0x166   :  { %v2198_v5 = vpop.f32.mrf.mxu0 }
 0x167   :  { %v1345_v54 = vadd.f32 %v2197_v3, %v1304_v1  ;;  %2297 = vmatpush3.bf16.msra.mxu1 %v2541_v48 }
 0x168   :  { %v2199_v8 = vpop.f32.mrf.mxu0  ;;  %2298 = vmatprep.subr.bf16.mxu1 %v2575_v34 }
 0x169   :  { %v2200_v11 = vadd.f32 %v2199_v8, %v2198_v5  ;;  %v1386_v12 = vadd.f32 %v1385_v52, %v1345_v54 }
 0x16b   :  { %v1348_v14 = vadd.f32 %v2200_v11, %v1307_v10  ;;  %v1394_v6 = vmax.f32 %v1386_v12, 0.0  ;;  %2299 = vmatpush3.bf16.msra.mxu1 %v2542_v49 }
 0x16c   :  { %2300 = vmatprep.subr.bf16.mxu1 %v2575_v34 }
 0x16d   :  { %v1389_v15 = vadd.f32 %v1388_v55, %v1348_v14 }
 0x16f   :  { %v1397_v9 = vmax.f32 %v1389_v15, 0.0  ;;  %2301 = vmatpush3.bf16.msra.mxu1 %v2543_v50 }
 0x171   :  { %v1400_v16 = vpack.c.bf16 %v1397_v9, %v1394_v6 }
 0x173   :  { %2263 = vmatmul.mubr.msk.bf16.vlgmr.msra.gmra.mxu0 %vm1568_vm2, %v1400_v16 }
 0x174   :  { %2282 = vmatprep.mubr.msk.bf16.mxu0 %vm2576_vm1, %v2575_v34  ;;  %2267 = vmatpush3.bf16.msra.mxu0 %v2528_v17 }
 0x175   :  { %2268 = vmatprep.subr.bf16.mxu0 %v2575_v34 }
 0x178   :  { %2269 = vmatpush3.bf16.msra.mxu0 %v2529_v18 }
 0x179   :  { %2270 = vmatprep.subr.bf16.mxu0 %v2575_v34 }
 0x17c   :  { %2271 = vmatpush3.bf16.msra.mxu0 %v2530_v19 }
 0x17d   :  { %2272 = vmatprep.subr.bf16.mxu0 %v2575_v34 }
 0x180   :  { %2273 = vmatpush3.bf16.msra.mxu0 %v2531_v20 }
 0x181   :  { %2274 = vmatprep.subr.bf16.mxu0 %v2575_v34 }
 0x184   :  { %2275 = vmatpush3.bf16.msra.mxu0 %v2532_v21 }
 0x185   :  { %2276 = vmatprep.subr.bf16.mxu0 %v2575_v34 }
 0x188   :  { %2277 = vmatpush3.bf16.msra.mxu0 %v2533_v22 }
 0x189   :  { %2278 = vmatprep.subr.bf16.mxu0 %v2575_v34 }
 0x18c   :  { %2279 = vmatpush3.bf16.msra.mxu0 %v2534_v23 }
 0x18d   :  { %2280 = vmatprep.subr.bf16.mxu0 %v2575_v34  ;;  %v1885_v34 = vand.u32 127, %v253_v4 }
 0x18f   :  { %vm1886_vm3 = vcmp.lt.s32.totalorder %v1885_v34, 10 }
 0x190   :  { %2281 = vmatpush3.bf16.msra.mxu0 %v2535_v25 }
 0x212   :  { %v2219_v31 = vpop.f32.mrf.mxu1 }
 0x214   :  { %v2220_v32 = vpop.f32.mrf.mxu1 }
 0x215   :  { %v2221_v36 = vadd.f32 %v2220_v32, %v2219_v31 }
 0x216   :  { %v2222_v33 = vpop.f32.mrf.mxu1 }
 0x217   :  { %v1607_v39 = vadd.f32 %v2221_v36, %v2086_v37 }
 0x218   :  { %v2223_v35 = vpop.f32.mrf.mxu1 }
 0x219   :  { %v2224_v13 = vadd.f32 %v2223_v35, %v2222_v33 }
 0x21b   :  { %v1610_v42 = vadd.f32 %v2224_v13, %v2086_v37 }
 0x233   :  { %v1647_v38 = vpop.f32.mrf.mxu0 }
 0x234   :  { %v1648_v41 = vadd.f32 %v1647_v38, %v1607_v39 }
 0x235   :  { %v2264_v40 = vpop.f32.mrf.mxu0 }
 0x236   :  { %v1654_v45 = vmax.f32 %v1648_v41, 0.0 }
 0x237   :  { %v1650_v43 = vpop.f32.mrf.mxu0 }
 0x238   :  { %v1651_v24 = vadd.f32 %v1650_v43, %v1610_v42 }
 0x239   :  { %v2265_v44 = vpop.f32.mrf.mxu0 }
 0x23a   :  { %v1655_v46 = vmax.f32 %v1651_v24, 0.0 }
 0x23c   :  { %v1656_v47 = vpack.c.bf16 %v1655_v46, %v1654_v45 }
 0x23e   :  { %2283 = vmatmul.mubr.bf16.vlgmr.msra.gmra.mxu0 %v1656_v47 }
 0x2fe   :  { %v1762_v52 = vpop.f32.mrf.mxu0 }
 0x2ff   :  { %v1763_v55 = vadd.f32 %v2108_v51, %v1762_v52 }
 0x300   :  { %v2284_v53 = vpop.f32.mrf.mxu0 }
 0x301   :  { %v1769_v59 = vmax.f32 %v1763_v55, 0.0 }
 0x302   :  { %v1765_v56 = vpop.f32.mrf.mxu0 }
 0x303   :  { %v1766_v57 = vadd.f32 %v2108_v51, %v1765_v56 }
 0x304   :  { %v2285_v58 = vpop.f32.mrf.mxu0 }
 0x305   :  { %v1770_v60 = vmax.f32 %v1766_v57, 0.0 }
 0x307   :  { %v1771_v61 = vpack.c.bf16 %v1770_v60, %v1769_v59 }
 0x309   :  { %2303 = vmatmul.mubr.bf16.vlgmr.msra.gmra.mxu1 %v1771_v61 }
 0x3c9   :  { %v1877_v63 = vpop.f32.mrf.mxu1 }
 0x3ca   :  { %v1878_v0 = vadd.f32 %v2117_v62, %v1877_v63 }
 0x3cb   :  { %v2304_v1 = vpop.f32.mrf.mxu1 }
 0x3cc   :  { %v1887_v2 = vsel %vm1886_vm3, %v1878_v0, -inf }
 0x3cd   :  { %1889 = vmax.xlane.f32.xlu0 %v1887_v2  ;;  %v1880_v3 = vpop.f32.mrf.mxu1 }
 0x3ce   :  { %v1881_v5 = vadd.f32 %v2117_v62, %v1880_v3 }
 0x3cf   :  { %v2305_v7 = vpop.f32.mrf.mxu1 }
 0x3d0   :  { %v1888_v54 = vsel %vm1886_vm3, %v1881_v5, -inf }
 0x3d1   :  { %1891 = vmax.xlane.f32.xlu0 %v1888_v54 }
 0x456   :  { %v1890_v8 = vpop.xlane.xlu0 %1889 }
 0x457   :  { %v1893_v10 = vsub.f32 %v1887_v2, %v1890_v8 }
 0x459   :  { %v1895_v4 = vmul.f32 1.442695, %v1893_v10 }
 0x45a   :  { %v1892_v11 = vpop.xlane.xlu0 %1891 }
 0x45b   :  { %v1894_v12 = vsub.f32 %v1888_v54, %v1892_v11  ;;  %2544 = vpow2.f32 %v1895_v4 }
 0x45d   :  { %v1897_v14 = vmul.f32 1.442695, %v1894_v12 }
 0x45f   :  { %2546 = vpow2.f32 %v1897_v14 }
 0x468   :  { %v2545_v15 = vpop.eup %2544 }
 0x469   :  { %1899 = vadd.xlane.f32.xlu1 %v2545_v15 }
 0x46c   :  { %v2547_v6 = vpop.eup %2546 }
 0x46d   :  { %1901 = vadd.xlane.f32.xlu1 %v2547_v6 }
 0x4f2   :  { %v1900_v9 = vpop.xlane.xlu1 %1899 }
 0x4f3   :  { %2548 = vlog2.f32 %v1900_v9 }
 0x4f6   :  { %v1902_v16 = vpop.xlane.xlu1 %1901 }
 0x4f7   :  { %2550 = vlog2.f32 %v1902_v16 }
 0x500   :  { %v2549_v17 = vpop.eup %2548 }
 0x501   :  { %v1904_v18 = vmul.f32 0.6931472, %v2549_v17 }
 0x503   :  { %v1907_v20 = vsub.f32 %v1893_v10, %v1904_v18 }
 0x504   :  { %v2551_v19 = vpop.eup %2550 }
 0x505   :  { %v1906_v21 = vmul.f32 0.6931472, %v2551_v19  ;;  %v1909_v23 = vsel %vm1886_vm3, %v1907_v20, 0.0 }
 0x507   :  { %v1908_v22 = vsub.f32 %v1894_v12, %v1906_v21 }
 0x509   :  { %v1910_v25 = vsel %vm1886_vm3, %v1908_v22, 0.0 }
 0x50a   :  { %v2133_v26 = vpack.c.bf16 %v1910_v25, %v1909_v23 }
 0x50c   :  { %2134 = vst [vmem:[#allocation2] sm:$0xff] %v2133_v26  }
 0x50d   :  { %2563 = shalt.err (!%p2560_p4)
}
 0x50e   :  { %s2578_s19 = smov 64   ;;  %s2579_s20 = smov 4  }
 0x50f   :  { %1932 = dma.vmem_to_hbm [thread:$0]  %s1927_s7, 128, %s3306_s9, [#allocation3], %s2578_s19, %s2578_s19, %s2579_s20  }
 0x510   :  { %2572 = dma.done.wait [#allocation3], 128  }
 0x511   :  { %2573 = vsyncadd [#allocation3], 4294967168 }
 0x512   :  { %1936 = vsyncpa [#allocation3], 1 }

</bundles_post_ra>
